<compile_context>
chip_gen: v6e
topology: v6e:2x2x1
jax: 0.10.0
libtpu: 0.0.40
codegen_flags: <defaults>
</compile_context>

<pallas_src>
import functools

import jax
import jax.numpy as jnp
from jax import lax
from jax.experimental import pallas as pl
from jax.experimental.pallas import tpu as pltpu

CLASS_NUM = 4
GAMMA = 2
LB_SMOOTH = 0.0
REDUCTION = "mean"


def _device_kind():
    try:
        return jax.devices()[0].device_kind.lower()
    except Exception:
        return ""


def _default_num_parts():
    # 2 TensorCores per chip only on v7x; on single-TC v5e/v6e a 2-way split is
    # pure overhead (extra tail block, second accumulator/writeback).
    return 2 if "v7" in _device_kind() else 1


def _default_tile_n():
    # ~1-2 MiB of useful slab payload per grid step reaches the ~85% HBM-roofline
    # plateau. 64K lanes -> ~6 MiB VMEM (double-buffered slab + accumulator):
    # fits v5e's 16 MiB default scoped limit. 128K lanes on v6e/v7x (32 MiB).
    kind = _device_kind()
    if "v6" in kind or "v7" in kind:
        return 131072
    return 65536


def _focal_loss_kernel(slab_ref, alpha_ref, out_ref, acc_ref, *,
                       class_num, gamma, lb_smooth, n_total, tile_n,
                       steps_per_part, use_alpha):
    part = pl.program_id(0)   # per-TensorCore partition (size 1 on v5e/v6e)
    step = pl.program_id(1)   # reduction axis over sample tiles

    @pl.when(step == 0)
    def _init():
        acc_ref[...] = jnp.zeros_like(acc_ref)

    # Slab block: rows [0, C) = f32 logits (classes on sublanes, samples on
    # lanes), row C = int32 targets bit-cast to f32 (free: the C-row block is
    # sublane-padded to 8 rows anyway).
    logits = slab_ref[0:class_num, :]                                  # (C, W) f32
    tgt = pltpu.bitcast(slab_ref[class_num:class_num + 1, :], jnp.int32)  # (1, W)

    # Numerically-stable log-softmax evaluated only at the target class.
    m = jnp.max(logits, axis=0, keepdims=True)                         # (1, W)
    shifted = logits - m                                               # (C, W)
    log_denom = jnp.log(jnp.sum(jnp.exp(shifted), axis=0, keepdims=True))

    # Static C-way select chain (cheaper than one-hot iota+cmp+cast+mul+sum);
    # reuses the same comparisons for the alpha gather.
    shifted_t = shifted[0:1, :]
    if use_alpha:
        a_t = alpha_ref[0:1, 0:1]
    for ci in range(1, class_num):
        is_ci = tgt == ci
        shifted_t = jnp.where(is_ci, shifted[ci:ci + 1, :], shifted_t)
        if use_alpha:
            a_t = jnp.where(is_ci, alpha_ref[ci:ci + 1, 0:1], a_t)

    log_p_t = shifted_t - log_denom                                    # (1, W)
    p_t = jnp.exp(log_p_t)

    # target == 2 is the "negative" class in the reference module.
    is_neg = tgt == 2
    base = jnp.where(is_neg,
                     jnp.maximum(1.0 - lb_smooth - p_t, 0.0),
                     1.0 - p_t)
    if float(gamma) == int(gamma):
        factor = lax.integer_pow(base, int(gamma))    # plain VPU muls
    else:
        # TODO(synk): non-integer gamma lowers via exp(g*log(base)) and can NaN
        # when the clamped negative-branch base is exactly 0.
        factor = base ** gamma

    loss_i = -factor * log_p_t
    if use_alpha:
        loss_i = a_t * loss_i

    # Mask ragged-tail / fully-out-of-range lanes with a select (keeps garbage
    # NaN/Inf from the unpadded tail out of the sum). Divide by true N outside.
    lane = lax.broadcasted_iota(jnp.int32, (1, tile_n), 1)
    global_idx = (part * steps_per_part + step) * tile_n + lane
    loss_i = jnp.where(global_idx < n_total, loss_i, 0.0)

    acc_ref[...] = acc_ref[...] + loss_i

    # Last step: one cross-lane reduce (XLU, otherwise idle) into a tiny
    # (8, 128) per-part output block instead of an (8, TILE_N) HBM writeback.
    @pl.when(step == steps_per_part - 1)
    def _finalize():
        part_sum = jnp.sum(acc_ref[...], axis=1, keepdims=True)        # (1, 1)
        row = lax.broadcasted_iota(jnp.int32, (8, 128), 0)
        col = lax.broadcasted_iota(jnp.int32, (8, 128), 1)
        out_ref[...] = jnp.where((row == 0) & (col == 0), part_sum, 0.0)


def multi_ce_focal_loss(predict, target, alpha=None, gamma=GAMMA,
                        lb_smooth=LB_SMOOTH, reduction=REDUCTION,
                        class_num=None, tile_n=None, num_parts=None):
    if alpha is not None:
        c = alpha.shape[0]
    else:
        c = class_num if class_num is not None else predict.shape[-1]

    pred2d = predict.reshape(-1, c)                 # (N, C)
    n = pred2d.shape[0]

    if num_parts is None:
        num_parts = _default_num_parts()
    if tile_n is None:
        tile_n = _default_tile_n()
    tile_n = min(tile_n, max(128, pl.cdiv(n, 128) * 128))   # lane-aligned tile

    steps_total = pl.cdiv(n, tile_n)
    num_parts = max(1, min(num_parts, steps_total))
    steps_per_part = pl.cdiv(steps_total, num_parts)

    # Single fused wrapper pass: lane-dense transpose (C, N) + bit-cast int32
    # targets appended as one extra f32 row. No padding: ragged tail is handled
    # by Pallas + the in-kernel mask.
    logits_t = pred2d.T.astype(jnp.float32)                            # (C, N)
    tgt_bits = lax.bitcast_convert_type(
        target.reshape(1, -1).astype(jnp.int32), jnp.float32)          # (1, N)
    slab = jnp.concatenate([logits_t, tgt_bits], axis=0)               # (C+1, N)

    use_alpha = alpha is not None
    alpha_col = (alpha.reshape(c, 1).astype(jnp.float32) if use_alpha
                 else jnp.ones((c, 1), jnp.float32))

    kernel = functools.partial(
        _focal_loss_kernel, class_num=c, gamma=gamma,
        lb_smooth=float(lb_smooth), n_total=n, tile_n=tile_n,
        steps_per_part=steps_per_part, use_alpha=use_alpha)

    # Clamp the block index so a fully-out-of-range (part, step) pair (only
    # possible when the part split doesn't divide the block count) re-loads a
    # valid block; the in-kernel global-index mask zeroes its contribution.
    def slab_index_map(p, s):
        return (0, jnp.minimum(p * steps_per_part + s, steps_total - 1))

    if num_parts > 1 and hasattr(pltpu, "CORE_PARALLEL"):
        dim_sem = (pltpu.CORE_PARALLEL, pltpu.ARBITRARY)   # v7x: real 2-TC split
    else:
        dim_sem = ("parallel", "arbitrary")

    partials = pl.pallas_call(
        kernel,
        out_shape=jax.ShapeDtypeStruct((num_parts * 8, 128), jnp.float32),
        grid=(num_parts, steps_per_part),
        in_specs=[
            pl.BlockSpec((c + 1, tile_n), slab_index_map),
            pl.BlockSpec((c, 1), lambda p, s: (0, 0)),
        ],
        out_specs=pl.BlockSpec((8, 128), lambda p, s: (p, 0)),
        scratch_shapes=[pltpu.VMEM((1, tile_n), jnp.float32)],
        compiler_params=pltpu.CompilerParams(dimension_semantics=dim_sem),
    )(slab, alpha_col)

    total = jnp.sum(partials)   # tiny (num_parts*8, 128) final reduce in XLA
    if reduction == "mean":
        return total / n
    if reduction == "sum":
        return total
    # TODO(synk): reduction='none' (per-sample losses in torch's positive/negative
    # cat ordering) is not representable by this scalar-output kernel.
    raise NotImplementedError(f"reduction={reduction!r}")


def _reference_loss(predict, target, alpha, gamma, lb_smooth, reduction):
    c = predict.shape[-1]
    p = jax.nn.softmax(predict.reshape(-1, c).astype(jnp.float32), axis=-1)
    t = target.reshape(-1)
    onehot = jax.nn.one_hot(t, c, dtype=jnp.float32)
    p_t = jnp.sum(p * onehot, axis=-1)
    a_t = alpha.reshape(-1)[t]
    is_neg = t == 2
    base = jnp.where(is_neg, jnp.maximum(1.0 - lb_smooth - p_t, 0.0), 1.0 - p_t)
    loss = -a_t * (base ** gamma) * jnp.log(p_t)
    return jnp.mean(loss) if reduction == "mean" else jnp.sum(loss)


if __name__ == "__main__":
    key = jax.random.PRNGKey(0)
    k_pred, k_tgt = jax.random.split(key)

    # predict: (..., class_num) logits; target: integer labels in [0, class_num)
    predict = jax.random.normal(k_pred, (8, 16, CLASS_NUM), dtype=jnp.float32)
    target = jax.random.randint(k_tgt, (8, 16), 0, CLASS_NUM, dtype=jnp.int32)

    # torch default: alpha = ones(class_num, 1)
    alpha = jnp.ones((CLASS_NUM, 1), dtype=jnp.float32)

    loss = jax.block_until_ready(multi_ce_focal_loss(predict, target, alpha))
    ref = jax.block_until_ready(
        _reference_loss(predict, target, alpha, GAMMA, LB_SMOOTH, REDUCTION))

    assert jnp.allclose(loss, ref, rtol=1e-5, atol=1e-5), (loss, ref)
    print("KERNEL_OK")
</pallas_src>

<mosaic_0001>
module attributes {stable_mosaic.version = 11 : i64} {
  func.func @_focal_loss_kernel(%arg0: i32, %arg1: i32, %arg2: memref<5x128xf32, #tpu.memory_space<vmem>>, %arg3: memref<4x1xf32, #tpu.memory_space<vmem>>, %arg4: memref<8x128xf32, #tpu.memory_space<vmem>>, %arg5: memref<1x128xf32, #tpu.memory_space<vmem>>) attributes {dimension_semantics = [#tpu.dimension_semantics<parallel>, #tpu.dimension_semantics<arbitrary>], iteration_bounds = array<i64: 1, 1>, scalar_prefetch = 0 : i64, scratch_operands = 1 : i64, tpu.core_type = #tpu.core_type<tc>, window_params = [{transform_indices = @transform_0, window_bounds = array<i64: 5, 128>}, {pipeline_mode = #tpu.pipeline_mode<synchronous>, transform_indices = @transform_1, window_bounds = array<i64: 4, 1>}, {transform_indices = @transform_2, window_bounds = array<i64: 8, 128>}]} {
    %c0_i32 = arith.constant 0 : i32
    %0 = arith.cmpi eq, %arg1, %c0_i32 : i32
    %1 = arith.extui %0 : i1 to i32
    %c0_i32_0 = arith.constant 0 : i32
    %2 = arith.cmpi ne, %1, %c0_i32_0 : i32
    scf.if %2 {
      %cst_23 = arith.constant 0.000000e+00 : f32
      %74 = vector.broadcast %cst_23 : f32 to vector<1x128xf32>
      %c0_24 = arith.constant 0 : index
      %c0_25 = arith.constant 0 : index
      %75 = vector.load %arg5[%c0_24, %c0_25] : memref<1x128xf32, #tpu.memory_space<vmem>>, vector<1x128xf32>
      tpu.vector_store %arg5[%c0_24, %c0_25], %74 {strides = array<i32>} : memref<1x128xf32, #tpu.memory_space<vmem>>, vector<1x128xf32>,
    } else {
    }
    %c0 = arith.constant 0 : index
    %c0_1 = arith.constant 0 : index
    %3 = vector.load %arg2[%c0, %c0_1] : memref<5x128xf32, #tpu.memory_space<vmem>>, vector<4x128xf32>
    %c4 = arith.constant 4 : index
    %c0_2 = arith.constant 0 : index
    %4 = vector.load %arg2[%c4, %c0_2] : memref<5x128xf32, #tpu.memory_space<vmem>>, vector<1x128xf32>
    %5 = tpu.bitcast %4 : vector<1x128xf32> -> vector<1x128xi32>
    %cst = arith.constant dense<0xFF800000> : vector<128xf32>
    %6 = vector.multi_reduction <maximumf>, %3, %cst [0] : vector<4x128xf32> to vector<128xf32>
    %7 = vector.shape_cast %6 : vector<128xf32> to vector<1x128xf32>
    %8 = vector.broadcast %7 : vector<1x128xf32> to vector<4x128xf32>
    %9 = arith.subf %3, %8 : vector<4x128xf32>
    %10 = math.exp %9 : vector<4x128xf32>
    %cst_3 = arith.constant dense<0.000000e+00> : vector<128xf32>
    %11 = vector.multi_reduction <add>, %10, %cst_3 [0] : vector<4x128xf32> to vector<128xf32>
    %12 = vector.shape_cast %11 : vector<128xf32> to vector<1x128xf32>
    %13 = math.log %12 : vector<1x128xf32>
    %14 = vector.extract_strided_slice %9 {offsets = [0, 0], sizes = [1, 128], strides = [1, 1]} : vector<4x128xf32> to vector<1x128xf32>
    %c0_4 = arith.constant 0 : index
    %c0_5 = arith.constant 0 : index
    %15 = vector.load %arg3[%c0_4, %c0_5] : memref<4x1xf32, #tpu.memory_space<vmem>>, vector<1x1xf32>
    %c1_i32 = arith.constant 1 : i32
    %16 = vector.broadcast %c1_i32 : i32 to vector<1x128xi32>
    %17 = arith.cmpi eq, %5, %16 : vector<1x128xi32>
    %18 = vector.extract_strided_slice %9 {offsets = [1, 0], sizes = [1, 128], strides = [1, 1]} : vector<4x128xf32> to vector<1x128xf32>
    %19 = arith.select %17, %18, %14 : vector<1x128xi1>, vector<1x128xf32>
    %c1 = arith.constant 1 : index
    %c0_6 = arith.constant 0 : index
    %20 = vector.load %arg3[%c1, %c0_6] : memref<4x1xf32, #tpu.memory_space<vmem>>, vector<1x1xf32>
    %21 = vector.shape_cast %20 : vector<1x1xf32> to vector<1x1xf32>
    %22 = vector.broadcast %21 : vector<1x1xf32> to vector<1x128xf32>
    %23 = vector.shape_cast %15 : vector<1x1xf32> to vector<1x1xf32>
    %24 = vector.broadcast %23 : vector<1x1xf32> to vector<1x128xf32>
    %25 = arith.select %17, %22, %24 : vector<1x128xi1>, vector<1x128xf32>
    %c2_i32 = arith.constant 2 : i32
    %26 = vector.broadcast %c2_i32 : i32 to vector<1x128xi32>
    %27 = arith.cmpi eq, %5, %26 : vector<1x128xi32>
    %28 = vector.extract_strided_slice %9 {offsets = [2, 0], sizes = [1, 128], strides = [1, 1]} : vector<4x128xf32> to vector<1x128xf32>
    %29 = arith.select %27, %28, %19 : vector<1x128xi1>, vector<1x128xf32>
    %c2 = arith.constant 2 : index
    %c0_7 = arith.constant 0 : index
    %30 = vector.load %arg3[%c2, %c0_7] : memref<4x1xf32, #tpu.memory_space<vmem>>, vector<1x1xf32>
    %31 = vector.shape_cast %30 : vector<1x1xf32> to vector<1x1xf32>
    %32 = vector.broadcast %31 : vector<1x1xf32> to vector<1x128xf32>
    %33 = arith.select %27, %32, %25 : vector<1x128xi1>, vector<1x128xf32>
    %c3_i32 = arith.constant 3 : i32
    %34 = vector.broadcast %c3_i32 : i32 to vector<1x128xi32>
    %35 = arith.cmpi eq, %5, %34 : vector<1x128xi32>
    %36 = vector.extract_strided_slice %9 {offsets = [3, 0], sizes = [1, 128], strides = [1, 1]} : vector<4x128xf32> to vector<1x128xf32>
    %37 = arith.select %35, %36, %29 : vector<1x128xi1>, vector<1x128xf32>
    %c3 = arith.constant 3 : index
    %c0_8 = arith.constant 0 : index
    %38 = vector.load %arg3[%c3, %c0_8] : memref<4x1xf32, #tpu.memory_space<vmem>>, vector<1x1xf32>
    %39 = vector.shape_cast %38 : vector<1x1xf32> to vector<1x1xf32>
    %40 = vector.broadcast %39 : vector<1x1xf32> to vector<1x128xf32>
    %41 = arith.select %35, %40, %33 : vector<1x128xi1>, vector<1x128xf32>
    %42 = arith.subf %37, %13 : vector<1x128xf32>
    %43 = math.exp %42 : vector<1x128xf32>
    %c2_i32_9 = arith.constant 2 : i32
    %44 = vector.broadcast %c2_i32_9 : i32 to vector<1x128xi32>
    %45 = arith.cmpi eq, %5, %44 : vector<1x128xi32>
    %cst_10 = arith.constant 1.000000e+00 : f32
    %46 = vector.broadcast %cst_10 : f32 to vector<1x128xf32>
    %47 = arith.subf %46, %43 : vector<1x128xf32>
    %cst_11 = arith.constant 0.000000e+00 : f32
    %48 = vector.broadcast %cst_11 : f32 to vector<1x128xf32>
    %49 = arith.maximumf %47, %48 : vector<1x128xf32>
    %cst_12 = arith.constant 1.000000e+00 : f32
    %50 = vector.broadcast %cst_12 : f32 to vector<1x128xf32>
    %51 = arith.subf %50, %43 : vector<1x128xf32>
    %52 = arith.select %45, %49, %51 : vector<1x128xi1>, vector<1x128xf32>
    %53 = arith.mulf %52, %52 : vector<1x128xf32>
    %cst_13 = arith.constant 0.000000e+00 : f32
    %54 = vector.broadcast %cst_13 : f32 to vector<1x128xf32>
    %55 = arith.subf %54, %53 : vector<1x128xf32>
    %56 = arith.mulf %55, %42 : vector<1x128xf32>
    %57 = arith.mulf %41, %56 : vector<1x128xf32>
    %58 = tpu.iota {dimensions = array<i32: 1>} : vector<1x128xi32>
    %c1_i32_14 = arith.constant 1 : i32
    %59 = arith.muli %arg0, %c1_i32_14 : i32
    %60 = arith.addi %59, %arg1 : i32
    %c128_i32 = arith.constant 128 : i32
    %61 = arith.muli %60, %c128_i32 : i32
    %62 = vector.broadcast %61 : i32 to vector<1x128xi32>
    %63 = arith.addi %62, %58 : vector<1x128xi32>
    %c128_i32_15 = arith.constant 128 : i32
    %64 = vector.broadcast %c128_i32_15 : i32 to vector<1x128xi32>
    %65 = arith.cmpi slt, %63, %64 : vector<1x128xi32>
    %cst_16 = arith.constant 0.000000e+00 : f32
    %66 = vector.broadcast %cst_16 : f32 to vector<1x128xf32>
    %67 = arith.select %65, %57, %66 : vector<1x128xi1>, vector<1x128xf32>
    %c0_17 = arith.constant 0 : index
    %c0_18 = arith.constant 0 : index
    %68 = vector.load %arg5[%c0_17, %c0_18] : memref<1x128xf32, #tpu.memory_space<vmem>>, vector<1x128xf32>
    %69 = arith.addf %68, %67 : vector<1x128xf32>
    %c0_19 = arith.constant 0 : index
    %c0_20 = arith.constant 0 : index
    %70 = vector.load %arg5[%c0_19, %c0_20] : memref<1x128xf32, #tpu.memory_space<vmem>>, vector<1x128xf32>
    tpu.vector_store %arg5[%c0_19, %c0_20], %69 {strides = array<i32>} : memref<1x128xf32, #tpu.memory_space<vmem>>, vector<1x128xf32>,
    %c0_i32_21 = arith.constant 0 : i32
    %71 = arith.cmpi eq, %arg1, %c0_i32_21 : i32
    %72 = arith.extui %71 : i1 to i32
    %c0_i32_22 = arith.constant 0 : i32
    %73 = arith.cmpi ne, %72, %c0_i32_22 : i32
    scf.if %73 {
      %c0_23 = arith.constant 0 : index
      %c0_24 = arith.constant 0 : index
      %74 = vector.load %arg5[%c0_23, %c0_24] : memref<1x128xf32, #tpu.memory_space<vmem>>, vector<1x128xf32>
      %cst_25 = arith.constant dense<0.000000e+00> : vector<1xf32>
      %75 = vector.multi_reduction <add>, %74, %cst_25 [1] : vector<1x128xf32> to vector<1xf32>
      %76 = vector.shape_cast %75 : vector<1xf32> to vector<1x1xf32>
      %77 = tpu.iota {dimensions = array<i32: 0>} : vector<8x128xi32>
      %78 = tpu.iota {dimensions = array<i32: 1>} : vector<8x128xi32>
      %c0_i32_26 = arith.constant 0 : i32
      %79 = vector.broadcast %c0_i32_26 : i32 to vector<8x128xi32>
      %80 = arith.cmpi eq, %77, %79 : vector<8x128xi32>
      %c0_i32_27 = arith.constant 0 : i32
      %81 = vector.broadcast %c0_i32_27 : i32 to vector<8x128xi32>
      %82 = arith.cmpi eq, %78, %81 : vector<8x128xi32>
      %83 = arith.andi %80, %82 : vector<8x128xi1>
      %cst_28 = arith.constant 0.000000e+00 : f32
      %84 = vector.shape_cast %76 : vector<1x1xf32> to vector<1x1xf32>
      %85 = vector.broadcast %84 : vector<1x1xf32> to vector<8x128xf32>
      %86 = vector.broadcast %cst_28 : f32 to vector<8x128xf32>
      %87 = arith.select %83, %85, %86 : vector<8x128xi1>, vector<8x128xf32>
      %c0_29 = arith.constant 0 : index
      %c0_30 = arith.constant 0 : index
      %88 = vector.load %arg4[%c0_29, %c0_30] : memref<8x128xf32, #tpu.memory_space<vmem>>, vector<8x128xf32>
      tpu.vector_store %arg4[%c0_29, %c0_30], %87 {strides = array<i32>} : memref<8x128xf32, #tpu.memory_space<vmem>>, vector<8x128xf32>,
    } else {
    }
    return
  }
  func.func @transform_0(%arg0: i32, %arg1: i32) -> (i32, i32) {
    %c1_i32 = arith.constant 1 : i32
    %0 = arith.muli %arg0, %c1_i32 : i32
    %1 = arith.addi %0, %arg1 : i32
    %c0_i32 = arith.constant 0 : i32
    %2 = arith.minsi %1, %c0_i32 : i32
    %c0_i32_0 = arith.constant 0 : i32
    %c0_i32_1 = arith.constant 0 : i32
    return %c0_i32_0, %2 : i32, i32
  }
  func.func @transform_1(%arg0: i32, %arg1: i32) -> (i32, i32) {
    %c0_i32 = arith.constant 0 : i32
    %c0_i32_0 = arith.constant 0 : i32
    %c0_i32_1 = arith.constant 0 : i32
    return %c0_i32, %c0_i32_0 : i32, i32
  }
  func.func @transform_2(%arg0: i32, %arg1: i32) -> (i32, i32) {
    %c0_i32 = arith.constant 0 : i32
    %c0_i32_0 = arith.constant 0 : i32
    return %arg0, %c0_i32 : i32, i32
  }
}

</mosaic_0001>

<bundles_post_ra>
// kernel: tpu_custom_call.1
= control target key start
LH: loop header
LB: loop body
LE: loop exit
PB: predicated region body
PF: predicated region fallthrough
CT: control target
= control target key end

     0   :  { %7 = vsyncpa [#allocation4], 0  ;;  %s259_s0 = inlined_call_operand.hbm [shape: f32[5,128], index: 0, kind: input, shape index: {}]   ;;  %s260_s1 = inlined_call_operand.vmem [shape: f32[4,1], index: 1, kind: input, shape index: {}]   ;;  %s261_s2 = inlined_call_operand.hbm [shape: f32[8,128], index: 2, kind: output, shape index: {}]  }
   0x1   :  { %8 = vsyncpa [#allocation5], 0  ;;  %s213_s9 = smov [#allocation3]  }
   0x2   :  { %s20_s10 = sshll.u32 %s213_s9, 4  ;;  %s21_s10 = int_to_ptr.vmem [resolvable:$true] %s20_s10 }
   0x3   :  { %s177_s11 = scalar_lea.vmem %s21_s10, 128  ;;  %p182_p1 = scmp.lt.s32.totalorder %s21_s10, %s21_s10 }
   0x4   :  { %p178_p0 = scmp.ne.s32.totalorder %s21_s10, %s177_s11  ;;  %p183_p2 = scmp.lt.s32.totalorder %s177_s11, %s177_s11 }
   0x6   :  { %p184_p3 = por %p183_p2, %p182_p1 }
   0x8   :  { %p185_p4 = pnand %p184_p3, %p178_p0 }
   0xa   :  { %188 = shalt.err (!%p185_p4)
}
   0xb   :  { %23 = dma.hbm_to_vmem [thread:$0]  %s259_s0, 128, %s21_s10, [#allocation4]  }
   0xc   :  { %209 = dma.done.wait [#allocation4], 128  }
   0xd   :  { %210 = vsyncadd [#allocation4], 4294967168  ;;  %v214_v0 = vmov 0   ;;  %v215_v1 = vmov 0.0   ;;  %vm40_vm0 = vcmask 1043456   ;;  %vm125_vm4 = vcmask 1040384  }
   0xe   :  { %162 = vset.pattern.permute.xlu1 %v214_v0  ;;  %161 = vset.pattern.permute.xlu0 %v214_v0  ;;  %36 = vst [vmem:[#allocation2] sm:$0x1] %v215_v1  ;;  %v82_v2 = vld [vmem:[%s260_s1 + $0x2] sm:$0x1]  ;;  %v66_v3 = vld [vmem:[%s260_s1 + $0x1] sm:$0x1]  ;;  %v110_v54 = vlaneseq }
   0xf   :  { %85 = vperm.xlu1 %162, %v82_v2   ;;  %69 = vperm.xlu0 %161, %v66_v3   ;;  %v37_v4 = vld [vmem:[#allocation3] sm:$0xf]  ;;  %v60_v6 = vld [vmem:[%s260_s1] sm:$0x1]  ;;  %v38_v24 = vld [vmem:[#allocation3 + $0x4] sm:$0x1] }
  0x10   :  { %v93_v5 = vld [vmem:[%s260_s1 + $0x3] sm:$0x1]  ;;  %v41_v7 = vsel %vm40_vm0, %v37_v4, -inf  ;;  %vm61_vm1 = vcmp.eq.s32.totalorder %v38_v24, 1  ;;  %vm78_vm2 = vcmp.eq.s32.totalorder %v38_v24, 2  ;;  %vm89_vm3 = vcmp.eq.s32.totalorder %v38_v24, 3 }
  0x11   :  { %v42_v8 = vrot.slane %v41_v7, 4  ;;  %v111_v55 = vand.u32 127, %v110_v54  ;;  %v130_v56 = vshrl.u32 %v110_v54, 7  ;;  %s216_s1 = smov [#allocation6]  }
  0x12   :  { %s146_s21 = sshll.u32 %s216_s1, 4  ;;  %s147_s21 = int_to_ptr.vmem [resolvable:$true] %s146_s21 }
  0x13   :  { %96 = vperm.xlu1 %162, %v93_v5   ;;  %74 = vperm.xlu0 %161, %v60_v6   ;;  %v43_v9 = vmax.f32 %v41_v7, %v42_v8  ;;  %vm131_vm5 = vcmp.eq.s32.totalorder %v130_v56, 0  ;;  %vm132_vm6 = vcmp.eq.s32.totalorder %v111_v55, 0  ;;  %v136_v57 = vsub.s32 0, %v130_v56  ;;  %s189_s22 = scalar_lea.vmem %s147_s21, 128  ;;  %p194_p6 = scmp.lt.s32.totalorder %s147_s21, %s147_s21 }
  0x14   :  { %vm133_vm7 = vmand %vm131_vm5, %vm132_vm6  ;;  %p190_p5 = scmp.ne.s32.totalorder %s147_s21, %s189_s22  ;;  %p195_p7 = scmp.lt.s32.totalorder %s189_s22, %s189_s22 }
  0x15   :  { %v44_v10 = vrot.slane %v43_v9, 2  ;;  %v118_v49 = vld [vmem:[#allocation2] sm:$0x1] }
  0x16   :  { %p196_p8 = por %p195_p7, %p194_p6 }
  0x17   :  { %v45_v11 = vmax.f32 %v43_v9, %v44_v10 }
  0x18   :  { %p197_p9 = pnand %p196_p8, %p190_p5 }
  0x19   :  { %v46_v12 = vrot.slane %v45_v11, 1 }
  0x1b   :  { %v47_v13 = vmax.f32 %v45_v11, %v46_v12 }
  0x1d   :  { %v48_v14 = vsub.f32 %v37_v4, %v47_v13 }
  0x1f   :  { %v49_v15 = vmul.f32 1.442695, %v48_v14  ;;  %v63_v25 = vrot.slane %v48_v14, 1  ;;  %v79_v26 = vrot.slane %v48_v14, 2  ;;  %v90_v29 = vrot.slane %v48_v14, 3 }
  0x21   :  { %163 = vpow2.f32 %v49_v15  ;;  %v65_v27 = vsel %vm61_vm1, %v63_v25, %v48_v14 }
  0x22   :  { %v81_v30 = vsel %vm78_vm2, %v79_v26, %v65_v27 }
  0x23   :  { %v92_v32 = vsel %vm89_vm3, %v90_v29, %v81_v30 }
  0x2e   :  { %v164_v16 = vpop.eup %163 }
  0x2f   :  { %v51_v17 = vsel %vm40_vm0, %v164_v16, 0.0 }
  0x30   :  { %v52_v18 = vrot.slane %v51_v17, 4 }
  0x32   :  { %v53_v19 = vadd.f32 %v52_v18, %v51_v17 }
  0x34   :  { %v54_v20 = vrot.slane %v53_v19, 2 }
  0x36   :  { %v55_v21 = vadd.f32 %v54_v20, %v53_v19 }
  0x38   :  { %v56_v22 = vrot.slane %v55_v21, 1 }
  0x3a   :  { %v57_v23 = vadd.f32 %v56_v22, %v55_v21 }
  0x3c   :  { %165 = vlog2.f32 %v57_v23 }
  0x49   :  { %v166_v28 = vpop.eup %165 }
  0x4a   :  { %v59_v31 = vmul.f32 0.6931472, %v166_v28 }
  0x4c   :  { %v100_v33 = vsub.f32 %v92_v32, %v59_v31 }
  0x4e   :  { %v101_v34 = vmul.f32 1.442695, %v100_v33 }
  0x50   :  { %167 = vpow2.f32 %v101_v34 }
  0x5d   :  { %v168_v35 = vpop.eup %167 }
  0x5e   :  { %v103_v36 = vsub.f32 1.0, %v168_v35 }
  0x60   :  { %v104_v37 = vmax.f32 %v103_v36, 0.0 }
  0x62   :  { %v105_v38 = vsel %vm78_vm2, %v104_v37, %v103_v36 }
  0x63   :  { %v106_v39 = vmul.f32 %v105_v38, %v105_v38 }
  0x65   :  { %v107_v42 = vsub.f32 0.0, %v106_v39 }
  0x67   :  { %v108_v44 = vmul.f32 %v107_v42, %v100_v33 }
  0x8a   :  { %v86_v40 = vpop.permute.xlu1 %85  ;;  %v70_v41 = vpop.permute.xlu0 %69 }
  0x8e   :  { %v75_v43 = vpop.permute.xlu0 %74  ;;  %v97_v46 = vpop.permute.xlu1 %96 }
  0x8f   :  { %v77_v45 = vsel %vm61_vm1, %v70_v41, %v75_v43 }
  0x90   :  { %v88_v47 = vsel %vm78_vm2, %v86_v40, %v77_v45 }
  0x91   :  { %v99_v48 = vsel %vm89_vm3, %v97_v46, %v88_v47 }
  0x92   :  { %v109_v50 = vmul.f32 %v108_v44, %v99_v48 }
  0x94   :  { %v119_v51 = vadd.f32 %v118_v49, %v109_v50 }
  0x96   :  { %120 = vst [vmem:[#allocation2] sm:$0x1] %v119_v51 }
  0x9d   :  { %v124_v52 = vld [vmem:[#allocation2] sm:$0x1] }
  0x9e   :  { %v126_v53 = vsel %vm125_vm4, %v124_v52, 0.0 }
  0x9f   :  { %127 = vadd.xlane.f32.xlu0 %v126_v53 }
 0x128   :  { %v128_v58 = vpop.xlane.xlu0 %127 }
 0x129   :  { %v137_v59 = vrot.slane %v128_v58, %v136_v57 }
 0x12b   :  { %v138_v60 = vsel %vm133_vm7, %v137_v59, 0.0 }
 0x12c   :  { %139 = vst [vmem:[#allocation6] sm:$0xff] %v138_v60 }
 0x12d   :  { %200 = shalt.err (!%p197_p9)
}
 0x12e   :  { %149 = dma.vmem_to_hbm [thread:$0]  %s147_s21, 128, %s261_s2, [#allocation5]  }
 0x12f   :  { %211 = dma.done.wait [#allocation5], 128  }
 0x130   :  { %212 = vsyncadd [#allocation5], 4294967168 }
 0x131   :  { %153 = vsyncpa [#allocation4], 1 }
 0x132   :  { %154 = vsyncpa [#allocation5], 1 }

</bundles_post_ra>
